<compile_context>
chip_gen: v5e
topology: v5e:2x2
jax: 0.10.0
libtpu: 0.0.40
codegen_flags: <defaults>
</compile_context>

<pallas_src>
import functools

import jax
import jax.numpy as jnp
from jax.experimental import pallas as pl
from jax.experimental.pallas import tpu as pltpu


def _controller_kernel(state_ref, hidden_ref, w_ref, b_ref, out_ref, *, S):
    # logits = [state | hidden] @ W^T + b, computed as two MXU passes over
    # static (aligned) slices of the transposed weight -- no concat needed.
    logits = jnp.dot(state_ref[...], w_ref[:S, :],
                     preferred_element_type=jnp.float32)
    logits = logits + jnp.dot(hidden_ref[...], w_ref[S:, :],
                              preferred_element_type=jnp.float32)
    logits = logits + b_ref[...]            # broadcast (1, A) bias, one VPU op

    # numerically-stable softmax along the action axis, exact normalization
    m = jnp.max(logits, axis=-1, keepdims=True)
    e = jnp.exp(logits - m)
    denom = jnp.sum(e, axis=-1, keepdims=True)
    out_ref[...] = (e / denom).astype(out_ref.dtype)


@jax.jit
def controller_forward(state, hidden, w_t, bias):
    """state: [B,S], hidden: [B,R], w_t: [S+R, A] (= fc.weight.T), bias: [1, A]."""
    B, S = state.shape
    R = hidden.shape[1]
    A = w_t.shape[1]

    cost = pl.CostEstimate(
        flops=2 * B * (S + R) * A + 4 * B * A,       # matmuls + softmax arithmetic
        transcendentals=B * A,                       # exp
        bytes_accessed=4 * (B * S + B * R + (S + R) * A + A + B * A),
    )

    kernel = functools.partial(_controller_kernel, S=S)
    return pl.pallas_call(
        kernel,
        out_shape=jax.ShapeDtypeStruct((B, A), jnp.float32),
        # Whole-array VMEM residency, no grid -> no pipeline prologue/epilogue.
        in_specs=[
            pl.BlockSpec(memory_space=pltpu.MemorySpace.VMEM),  # state
            pl.BlockSpec(memory_space=pltpu.MemorySpace.VMEM),  # hidden
            pl.BlockSpec(memory_space=pltpu.MemorySpace.VMEM),  # W^T
            pl.BlockSpec(memory_space=pltpu.MemorySpace.VMEM),  # bias
        ],
        out_specs=pl.BlockSpec(memory_space=pltpu.MemorySpace.VMEM),
        cost_estimate=cost,
    )(state, hidden, w_t, bias)


if __name__ == "__main__":
    # Controller(state=16, recurrents=16, actions=8), batch=2
    B, S, R, A = 2, 16, 16, 8

    key = jax.random.PRNGKey(0)
    k_state, k_hidden, k_w, k_b = jax.random.split(key, 4)

    # deterministic "nn.Linear"-style init: U(-1/sqrt(fan_in), 1/sqrt(fan_in))
    fan_in = S + R
    bound = 1.0 / jnp.sqrt(jnp.float32(fan_in))
    fc_weight = jax.random.uniform(k_w, (A, fan_in), jnp.float32, -bound, bound)
    fc_bias = jax.random.uniform(k_b, (A,), jnp.float32, -bound, bound)

    # One-time parameter layout done at init: W^T [S+R, A] and bias [1, A].
    w_t = jnp.asarray(fc_weight.T)
    bias = fc_bias.reshape(1, A)

    state = jax.random.normal(k_state, (B, S), jnp.float32)
    hidden = jax.random.normal(k_hidden, (B, R), jnp.float32)

    out = jax.block_until_ready(controller_forward(state, hidden, w_t, bias))

    # pure-JAX reference check (concat -> linear -> softmax)
    cat_in = jnp.concatenate([state, hidden], axis=-1)
    ref = jax.nn.softmax(cat_in @ fc_weight.T + fc_bias, axis=-1)
    assert jnp.allclose(out, ref, atol=1e-5, rtol=1e-5), "mismatch vs reference"
    assert jnp.allclose(jnp.sum(out, axis=-1), 1.0, atol=1e-5), "softmax rows must sum to 1"

    print("KERNEL_OK")
</pallas_src>

<mosaic_0001>
module attributes {stable_mosaic.version = 11 : i64} {
  func.func @_controller_kernel(%arg0: memref<2x16xf32, #tpu.memory_space<vmem>>, %arg1: memref<2x16xf32, #tpu.memory_space<vmem>>, %arg2: memref<32x8xf32, #tpu.memory_space<vmem>>, %arg3: memref<1x8xf32, #tpu.memory_space<vmem>>, %arg4: memref<2x8xf32, #tpu.memory_space<vmem>>) attributes {dimension_semantics = [], scalar_prefetch = 0 : i64, scratch_operands = 0 : i64, tpu.core_type = #tpu.core_type<tc>} {
    %c0 = arith.constant 0 : index
    %c0_0 = arith.constant 0 : index
    %0 = vector.load %arg0[%c0, %c0_0] : memref<2x16xf32, #tpu.memory_space<vmem>>, vector<2x16xf32>
    %c0_1 = arith.constant 0 : index
    %c0_2 = arith.constant 0 : index
    %1 = vector.load %arg2[%c0_1, %c0_2] : memref<32x8xf32, #tpu.memory_space<vmem>>, vector<16x8xf32>
    %cst = arith.constant dense<0.000000e+00> : vector<2x8xf32>
    %2 = tpu.matmul %0, %1, %cst {dimension_numbers = #tpu.dot_dimension_numbers<[1], [0], [0], [1], [0, 0, 1, 1], [], []>} : vector<2x16xf32>, vector<16x8xf32>, vector<2x8xf32> -> vector<2x8xf32>
    %c0_3 = arith.constant 0 : index
    %c0_4 = arith.constant 0 : index
    %3 = vector.load %arg1[%c0_3, %c0_4] : memref<2x16xf32, #tpu.memory_space<vmem>>, vector<2x16xf32>
    %c16 = arith.constant 16 : index
    %c0_5 = arith.constant 0 : index
    %4 = vector.load %arg2[%c16, %c0_5] : memref<32x8xf32, #tpu.memory_space<vmem>>, vector<16x8xf32>
    %cst_6 = arith.constant dense<0.000000e+00> : vector<2x8xf32>
    %5 = tpu.matmul %3, %4, %cst_6 {dimension_numbers = #tpu.dot_dimension_numbers<[1], [0], [0], [1], [0, 0, 1, 1], [], []>} : vector<2x16xf32>, vector<16x8xf32>, vector<2x8xf32> -> vector<2x8xf32>
    %6 = arith.addf %2, %5 : vector<2x8xf32>
    %c0_7 = arith.constant 0 : index
    %c0_8 = arith.constant 0 : index
    %7 = vector.load %arg3[%c0_7, %c0_8] : memref<1x8xf32, #tpu.memory_space<vmem>>, vector<1x8xf32>
    %8 = vector.broadcast %7 : vector<1x8xf32> to vector<2x8xf32>
    %9 = arith.addf %6, %8 : vector<2x8xf32>
    %cst_9 = arith.constant dense<0xFF800000> : vector<2xf32>
    %10 = vector.multi_reduction <maximumf>, %9, %cst_9 [1] : vector<2x8xf32> to vector<2xf32>
    %11 = vector.shape_cast %10 : vector<2xf32> to vector<2x1xf32>
    %12 = vector.broadcast %11 : vector<2x1xf32> to vector<2x8xf32>
    %13 = arith.subf %9, %12 : vector<2x8xf32>
    %14 = math.exp %13 : vector<2x8xf32>
    %cst_10 = arith.constant dense<0.000000e+00> : vector<2xf32>
    %15 = vector.multi_reduction <add>, %14, %cst_10 [1] : vector<2x8xf32> to vector<2xf32>
    %16 = vector.shape_cast %15 : vector<2xf32> to vector<2x1xf32>
    %17 = vector.broadcast %16 : vector<2x1xf32> to vector<2x8xf32>
    %18 = arith.divf %14, %17 : vector<2x8xf32>
    %c0_11 = arith.constant 0 : index
    %c0_12 = arith.constant 0 : index
    %19 = vector.load %arg4[%c0_11, %c0_12] : memref<2x8xf32, #tpu.memory_space<vmem>>, vector<2x8xf32>
    tpu.vector_store %arg4[%c0_11, %c0_12], %18 {strides = array<i32>} : memref<2x8xf32, #tpu.memory_space<vmem>>, vector<2x8xf32>,
    return
  }
}

</mosaic_0001>

<bundles_post_ra>
// kernel: controller_forward.1
= control target key start
LH: loop header
LB: loop body
LE: loop exit
PB: predicated region body
PF: predicated region fallthrough
CT: control target
= control target key end

     0   :  { %vm24_vm0 = vcmask 130048   ;;  %s205_s0 = inlined_call_operand.vmem [shape: f32[2,16], index: 0, kind: input, shape index: {}]   ;;  %s206_s1 = inlined_call_operand.vmem [shape: f32[2,16], index: 1, kind: input, shape index: {}]   ;;  %s207_s2 = inlined_call_operand.vmem [shape: f32[32,8], index: 2, kind: input, shape index: {}]   ;;  %s208_s3 = inlined_call_operand.vmem [shape: f32[1,8], index: 3, kind: input, shape index: {}]   ;;  %s209_s4 = inlined_call_operand.hbm [shape: f32[2,8], index: 4, kind: output, shape index: {}]  }
   0x1   :  { %v23_v0 = vld [vmem:[%s207_s2 + $0x18] sm:$0xff]  ;;  %v20_v1 = vld [vmem:[%s207_s2 + $0x8] sm:$0xff]  ;;  %v22_v2 = vld [vmem:[%s207_s2 + $0x10] sm:$0xff] }
   0x2   :  { %42 = vmatpush.msra.mxu0 %v23_v0  ;;  %65 = vmatpush.msra.mxu1 %v20_v1  ;;  %v19_v3 = vld [vmem:[%s207_s2] sm:$0xff] }
   0x3   :  { %v21_v4 = vld [vmem:[%s206_s1] sm:$0x3] }
   0x4   :  { %v18_v5 = vld [vmem:[%s205_s0] sm:$0x3] }
   0x5   :  { %9 = vsyncpa [#allocation3], 0  ;;  %43 = vmatpush.msra.mxu0 %v22_v2  ;;  %66 = vmatpush.msra.mxu1 %v19_v3  ;;  %v121_v6 = vld [vmem:[%s208_s3] ss:$0 sm:$0xff]  ;;  %vm76_vm1 = vcmask 58368   ;;  %s152_s0 = smov [#allocation2]  }
   0x6   :  { %118 = vmatmul.msk.f32.vlgmr.msra.gmra.mxu0 %vm24_vm0, %v21_v4  ;;  %119 = vmatmul.msk.f32.vlgmr.msra.gmra.mxu1 %vm24_vm0, %v18_v5  ;;  %s107_s1 = sshll.u32 %s152_s0, 4  ;;  %s109_s29 = sshll.u32 %s209_s4, 4  ;;  %s108_s1 = int_to_ptr.vmem [resolvable:$true] %s107_s1  ;;  %s110_s29 = int_to_ptr.hbm [resolvable:$true] %s109_s29 }
  0x83   :  { %v45_v7 = vpop.f32.mrf.mxu0  ;;  %v68_v8 = vpop.f32.mrf.mxu1 }
  0x84   :  { %v69_v9 = vadd.f32 %v68_v8, %v45_v7 }
  0x86   :  { %v75_v10 = vadd.f32 %v121_v6, %v69_v9 }
  0x88   :  { %v77_v11 = vsel %vm76_vm1, %v75_v10, -inf }
  0x89   :  { %78 = vmax.xlane.f32.xlu0 %v77_v11 }
  0xfc   :  { %v79_v12 = vpop.xlane.xlu0 %78 }
  0xfd   :  { %v80_v13 = vsub.f32 %v75_v10, %v79_v12 }
  0xff   :  { %v81_v14 = vmul.f32 1.442695, %v80_v13 }
 0x101   :  { %122 = vpow2.f32 %v81_v14 }
 0x107   :  { %v123_v15 = vpop.eup %122 }
 0x108   :  { %v83_v16 = vsel %vm76_vm1, %v123_v15, 0.0 }
 0x109   :  { %84 = vadd.xlane.f32.xlu0 %v83_v16 }
 0x17c   :  { %v85_v17 = vpop.xlane.xlu0 %84 }
 0x17d   :  { %124 = vrcp.f32 %v85_v17  ;;  %v97_v21 = vand.u32 2147483648, %v85_v17  ;;  %v95_v23 = vand.u32 2147483647, %v85_v17  ;;  %vm91_vm3 = vweird.f32 %v85_v17 }
 0x17f   :  { %v98_v25 = vor.u32 1.1754944e-38, %v97_v21  ;;  %vm96_vm5 = vcmp.eq.f32.partialorder %v95_v23, 8.507059e+37 }
 0x183   :  { %v125_v18 = vpop.eup %124 }
 0x184   :  { %v87_v19 = vmul.f32 %v125_v18, %v85_v17  ;;  %vm92_vm2 = vweird.f32 %v125_v18 }
 0x185   :  { %vm93_vm4 = vmor %vm91_vm3, %vm92_vm2 }
 0x186   :  { %v88_v20 = vsub.f32 1.0, %v87_v19 }
 0x188   :  { %v89_v22 = vmul.f32 %v125_v18, %v88_v20 }
 0x18a   :  { %v90_v24 = vadd.f32 %v125_v18, %v89_v22 }
 0x18c   :  { %v94_v26 = vsel %vm93_vm4, %v125_v18, %v90_v24 }
 0x18d   :  { %v99_v27 = vsel %vm96_vm5, %v98_v25, %v94_v26 }
 0x18e   :  { %v100_v28 = vmul.f32 %v123_v15, %v99_v27 }
 0x190   :  { %101 = vst.msk [vmem:[#allocation2] sm:$0x3] %vm76_vm1, %v100_v28 }
 0x191   :  { %112 = dma.vmem_to_hbm [thread:$0]  %s108_s1, 32, %s110_s29, [#allocation3]  }
 0x192   :  { %150 = dma.done.wait [#allocation3], 32  }
 0x193   :  { %151 = vsyncadd [#allocation3], 4294967264 }
 0x194   :  { %117 = vsyncpa [#allocation3], 1 }

</bundles_post_ra>
